<compile_context>
chip_gen: v6e
topology: v6e:2x2x1
jax: 0.10.0
libtpu: 0.0.40
codegen_flags: <defaults>
</compile_context>

<pallas_src>
import functools

import jax
import jax.numpy as jnp
from jax import lax
from jax.experimental import pallas as pl
from jax.experimental.pallas import tpu as pltpu


def _round_up(n, m):
    return ((n + m - 1) // m) * m


def _style_loss_kernel(x_ref, t_ref, out_ref, gx_ref, gt_ref, *maybe_dr,
                       M, TM, K, TK, num_row_blocks, shift, scale):
    """Accumulates row-block grams over K tiles; finalizes a partial loss."""
    dr_ref = maybe_dr[0] if maybe_dr else None          # (M, 1) f32 or None
    has_shift = dr_ref is not None

    i = pl.program_id(0)                                 # gram row block
    k = pl.program_id(1)                                 # K tile (reduction)
    nk = pl.num_programs(1)

    @pl.when(k == 0)
    def _init():
        gx_ref[...] = jnp.zeros_like(gx_ref)
        gt_ref[...] = jnp.zeros_like(gt_ref)
        if has_shift:
            dr_ref[...] = jnp.zeros_like(dr_ref)

    # Row-block start, clamped so the last block never reads out of bounds
    # (its leading rows overlap the previous block and are masked out below).
    if num_row_blocks == 1:
        start = 0
    else:
        start = jnp.minimum(i * TM, M - TM)

    dims = (((1,), (1,)), ((), ()))                      # contract over K

    def accum(xs, ts, xr, tr):
        gx_ref[...] += lax.dot_general(xr, xs, dims,
                                       preferred_element_type=jnp.float32)
        gt_ref[...] += lax.dot_general(tr, ts, dims,
                                       preferred_element_type=jnp.float32)
        if has_shift:
            rx = jnp.sum(xs, axis=1, keepdims=True)
            rt = jnp.sum(ts, axis=1, keepdims=True)
            dr_ref[...] += (rx - rt).astype(jnp.float32)

    def step(mask_cols):
        xs = x_ref[...]
        ts = t_ref[...]
        if mask_cols is not None:
            xs = jnp.where(mask_cols, xs, jnp.zeros_like(xs))
            ts = jnp.where(mask_cols, ts, jnp.zeros_like(ts))
        if num_row_blocks == 1:
            xr, tr = xs, ts
        else:
            xr = x_ref[pl.ds(start, TM), :]
            tr = t_ref[pl.ds(start, TM), :]
            if mask_cols is not None:
                xr = jnp.where(mask_cols, xr, jnp.zeros_like(xr))
                tr = jnp.where(mask_cols, tr, jnp.zeros_like(tr))
        accum(xs, ts, xr, tr)

    k_rem = K % TK
    if k_rem == 0:                                       # trace-time: no tail
        step(None)
    else:
        is_tail = k == nk - 1

        @pl.when(jnp.logical_not(is_tail))
        def _full_tile():
            step(None)

        @pl.when(is_tail)
        def _tail_tile():
            col = lax.broadcasted_iota(jnp.int32, (1, TK), 1)
            step(col < k_rem)

    @pl.when(k == nk - 1)
    def _finalize():
        d = gx_ref[...] - gt_ref[...]                    # (TM, M) f32
        s = jnp.float32(shift)
        if has_shift:
            # E = D + s * dr_p  (row-direction correction, lane broadcast)
            if num_row_blocks == 1:
                dr_blk = dr_ref[...]
            else:
                dr_blk = dr_ref[pl.ds(start, TM), :]     # (TM, 1)
            d = d + s * dr_blk

        if M % TM != 0:
            # Mask rows already counted by the previous (overlapping) block.
            first_valid = i * TM - start
            row = lax.broadcasted_iota(jnp.int32, (TM, 1), 0)
            d = jnp.where(row >= first_valid, d, jnp.zeros_like(d))
            n_valid = (TM - first_valid).astype(jnp.float32)
        else:
            n_valid = jnp.float32(TM)

        total = jnp.sum(d * d)
        if has_shift:
            # sum_q (E_pq + s*dr_q)^2 = sum E^2 + 2s*sum(E @ dr)
            #                           + n_valid * s^2 * sum(dr^2)
            dr = dr_ref[...]                             # (M, 1)
            ed = lax.dot_general(d, dr, (((1,), (0,)), ((), ())),
                                 preferred_element_type=jnp.float32,
                                 precision=lax.Precision.HIGHEST)
            total = (total + 2.0 * s * jnp.sum(ed)
                     + n_valid * (s * s) * jnp.sum(dr * dr))
        out_ref[0, 0] = jnp.float32(scale) * total


def _vmem_budget_bytes():
    """Generation-aware (budget, capacity) in bytes."""
    cap = 64 * 1024 * 1024
    try:
        info = pltpu.get_tpu_info()
        cap = int(getattr(info, "vmem_capacity_bytes", cap))
    except Exception:
        pass
    if cap >= 96 * 1024 * 1024:          # v5e / v6e: 128 MiB physical VMEM
        return 64 * 1024 * 1024, cap
    return 36 * 1024 * 1024, cap         # v7x: 64 MiB physical VMEM


def style_loss(x, target, weight=1.0, shifting_activation_value=0.0,
               max_tile_k=None, max_row_block=None):
    """weight * mse(gram(x), gram(target)) — matches the PyTorch StyleLoss."""
    assert x.shape == target.shape and x.dtype == target.dtype
    a, b, c, d = x.shape
    M = a * b
    K = c * d
    denom = float(a) * float(b) * float(c) * float(d)
    shift = float(shifting_activation_value)
    has_shift = shift != 0.0
    # weight * mean(((Gx - Gt)/denom)^2) == weight/(denom^2 * M^2) * sumsq(Gx-Gt)
    scale = float(weight) / (denom * denom * float(M) * float(M))

    feats_x = x.reshape(M, K)
    feats_t = target.reshape(M, K)
    itemsize = jnp.dtype(x.dtype).itemsize

    budget, vmem_cap = _vmem_budget_bytes()

    # ---- Gram row-block size (keeps the two (TM, M) f32 accumulators within
    # ---- ~half the budget so large M never blows VMEM; one block if M small).
    if M % 8 != 0:
        TM = M           # dynamic row starts stay sublane-aligned only if M%8==0
    else:
        tm_cap = max(8, ((budget // 2) // (2 * _round_up(M, 128) * 4) // 8) * 8)
        TM = min(M, tm_cap)
        if max_row_block is not None:
            TM = min(TM, max(8, (int(max_row_block) // 8) * 8))
    num_row_blocks = -(-M // TM)

    acc_bytes = 2 * _round_up(TM, 8) * _round_up(M, 128) * 4
    dr_bytes = _round_up(M, 8) * 128 * 4 if has_shift else 0

    # ---- K tile: as large as fits the remaining budget (lane-aligned), so the
    # ---- HBM stream is not dominated by per-grid-step fixed overhead.
    per_col = 4 * _round_up(M, 8) * itemsize     # 2 inputs x 2 pipeline buffers
    avail = budget - acc_bytes - dr_bytes - (2 << 20)
    tk_cap = max((avail // per_col // 128) * 128, 128)
    TK = min(_round_up(K, 128), tk_cap)
    if max_tile_k is not None:
        TK = min(TK, max(128, (int(max_tile_k) // 128) * 128))
    TK = max(TK, 128)

    num_k_steps = -(-K // TK)
    grid = (num_row_blocks, num_k_steps)

    in_spec = pl.BlockSpec((M, TK), lambda i, k: (0, k))
    out_spec = pl.BlockSpec((1, 1), lambda i, k: (i, 0),
                            memory_space=pltpu.MemorySpace.SMEM)
    scratch_shapes = [pltpu.VMEM((TM, M), jnp.float32),
                      pltpu.VMEM((TM, M), jnp.float32)]
    if has_shift:
        scratch_shapes.append(pltpu.VMEM((M, 1), jnp.float32))

    footprint = (4 * _round_up(M, 8) * TK * itemsize   # 2 inputs x 2 buffers
                 + acc_bytes + dr_bytes + (2 << 20))
    vmem_limit_bytes = int(min(max(footprint, 16 << 20), vmem_cap))

    kernel = functools.partial(
        _style_loss_kernel, M=M, TM=TM, K=K, TK=TK,
        num_row_blocks=int(num_row_blocks), shift=shift, scale=scale)

    partial_losses = pl.pallas_call(
        kernel,
        out_shape=jax.ShapeDtypeStruct((int(num_row_blocks), 1), jnp.float32),
        grid_spec=pltpu.PrefetchScalarGridSpec(
            num_scalar_prefetch=0,
            grid=grid,
            in_specs=[in_spec, in_spec],
            out_specs=out_spec,
            scratch_shapes=scratch_shapes,
        ),
        compiler_params=pltpu.CompilerParams(
            dimension_semantics=("parallel", "arbitrary"),
            vmem_limit_bytes=vmem_limit_bytes,
        ),
    )(feats_x, feats_t)
    return jnp.sum(partial_losses)


def _reference_style_loss(x, target, weight, shift):
    a, b, c, d = x.shape

    def gram(v):
        f = v.reshape(a * b, c * d).astype(jnp.float32) + shift
        g = jnp.matmul(f, f.T, precision=lax.Precision.HIGHEST)
        return g / (a * b * c * d)

    diff = gram(x) - gram(target)
    return weight * jnp.mean(diff * diff)


def _check(got, want):
    got = jax.block_until_ready(got)
    assert jnp.allclose(got, want, rtol=2e-3, atol=1e-6), (got, want)


if __name__ == "__main__":
    key = jax.random.PRNGKey(0)
    kx, kt, kx2, kt2, kx3, kt3, kx4, kt4 = jax.random.split(key, 8)

    # 1) Basic NCHW case, shift != 0 (hoisted correction path), single K tile.
    a, b, c, d = 2, 4, 16, 16
    x = jax.random.normal(kx, (a, b, c, d), dtype=jnp.float32)
    t = jax.random.normal(kt, (a, b, c, d), dtype=jnp.float32)
    loss = style_loss(x, t, weight=1000.0, shifting_activation_value=0.5)
    _check(loss, _reference_style_loss(x, t, 1000.0, 0.5))

    # 2) shift == 0 fast path (no row-sum scratch, no correction).
    loss0 = style_loss(x, t, weight=10.0, shifting_activation_value=0.0)
    _check(loss0, _reference_style_loss(x, t, 10.0, 0.0))

    # 3) Larger M, multi-step K grid (TK forced to 128 -> 3 steps, no tail).
    x2 = jax.random.normal(kx2, (2, 96, 16, 24), dtype=jnp.float32)
    t2 = jax.random.normal(kt2, (2, 96, 16, 24), dtype=jnp.float32)
    loss2 = style_loss(x2, t2, weight=1.0e6, shifting_activation_value=0.25,
                       max_tile_k=128)
    _check(loss2, _reference_style_loss(x2, t2, 1.0e6, 0.25))

    # 4) K not a multiple of 128 -> in-kernel tail-column mask (no jnp.pad).
    x3 = jax.random.normal(kx3, (2, 4, 10, 10), dtype=jnp.float32)
    t3 = jax.random.normal(kt3, (2, 4, 10, 10), dtype=jnp.float32)
    loss3 = style_loss(x3, t3, weight=100.0, shifting_activation_value=0.5)
    _check(loss3, _reference_style_loss(x3, t3, 100.0, 0.5))

    # 5) Gram row-block tiling (M=24, TM=16 -> 2 overlapping blocks) combined
    #    with a multi-step K grid and a masked K tail, with and without shift.
    x4 = jax.random.normal(kx4, (2, 12, 8, 20), dtype=jnp.float32)
    t4 = jax.random.normal(kt4, (2, 12, 8, 20), dtype=jnp.float32)
    loss4 = style_loss(x4, t4, weight=50.0, shifting_activation_value=0.3,
                       max_tile_k=128, max_row_block=16)
    _check(loss4, _reference_style_loss(x4, t4, 50.0, 0.3))
    loss5 = style_loss(x4, t4, weight=50.0, shifting_activation_value=0.0,
                       max_tile_k=128, max_row_block=16)
    _check(loss5, _reference_style_loss(x4, t4, 50.0, 0.0))

    print("KERNEL_OK")
</pallas_src>

<mosaic_0001>
module attributes {stable_mosaic.version = 11 : i64} {
  func.func @_style_loss_kernel(%arg0: i32, %arg1: i32, %arg2: memref<8x256xf32, #tpu.memory_space<vmem>>, %arg3: memref<8x256xf32, #tpu.memory_space<vmem>>, %arg4: memref<1x1xf32, #tpu.memory_space<smem>>, %arg5: memref<8x8xf32, #tpu.memory_space<vmem>>, %arg6: memref<8x8xf32, #tpu.memory_space<vmem>>, %arg7: memref<8x1xf32, #tpu.memory_space<vmem>>) attributes {dimension_semantics = [#tpu.dimension_semantics<parallel>, #tpu.dimension_semantics<arbitrary>], iteration_bounds = array<i64: 1, 1>, scalar_prefetch = 0 : i64, scratch_operands = 3 : i64, tpu.core_type = #tpu.core_type<tc>, window_params = [{transform_indices = @transform_0, window_bounds = array<i64: 8, 256>}, {transform_indices = @transform_1, window_bounds = array<i64: 8, 256>}, {transform_indices = @transform_2, window_bounds = array<i64: 1, 1>}]} {
    %c0_i32 = arith.constant 0 : i32
    %0 = arith.cmpi eq, %arg1, %c0_i32 : i32
    %1 = arith.extui %0 : i1 to i32
    %c0_i32_0 = arith.constant 0 : i32
    %2 = arith.cmpi ne, %1, %c0_i32_0 : i32
    scf.if %2 {
      %cst_21 = arith.constant 0.000000e+00 : f32
      %24 = vector.broadcast %cst_21 : f32 to vector<8x8xf32>
      %c0_22 = arith.constant 0 : index
      %c0_23 = arith.constant 0 : index
      %25 = vector.load %arg5[%c0_22, %c0_23] : memref<8x8xf32, #tpu.memory_space<vmem>>, vector<8x8xf32>
      tpu.vector_store %arg5[%c0_22, %c0_23], %24 {strides = array<i32>} : memref<8x8xf32, #tpu.memory_space<vmem>>, vector<8x8xf32>,
      %cst_24 = arith.constant 0.000000e+00 : f32
      %26 = vector.broadcast %cst_24 : f32 to vector<8x8xf32>
      %c0_25 = arith.constant 0 : index
      %c0_26 = arith.constant 0 : index
      %27 = vector.load %arg6[%c0_25, %c0_26] : memref<8x8xf32, #tpu.memory_space<vmem>>, vector<8x8xf32>
      tpu.vector_store %arg6[%c0_25, %c0_26], %26 {strides = array<i32>} : memref<8x8xf32, #tpu.memory_space<vmem>>, vector<8x8xf32>,
      %cst_27 = arith.constant 0.000000e+00 : f32
      %28 = vector.broadcast %cst_27 : f32 to vector<8x1xf32>
      %c0_28 = arith.constant 0 : index
      %c0_29 = arith.constant 0 : index
      %29 = vector.load %arg7[%c0_28, %c0_29] : memref<8x1xf32, #tpu.memory_space<vmem>>, vector<8x1xf32>
      tpu.vector_store %arg7[%c0_28, %c0_29], %28 {strides = array<i32>} : memref<8x1xf32, #tpu.memory_space<vmem>>, vector<8x1xf32>,
    } else {
    }
    %c0 = arith.constant 0 : index
    %c0_1 = arith.constant 0 : index
    %3 = vector.load %arg2[%c0, %c0_1] : memref<8x256xf32, #tpu.memory_space<vmem>>, vector<8x256xf32>
    %c0_2 = arith.constant 0 : index
    %c0_3 = arith.constant 0 : index
    %4 = vector.load %arg3[%c0_2, %c0_3] : memref<8x256xf32, #tpu.memory_space<vmem>>, vector<8x256xf32>
    %c0_4 = arith.constant 0 : index
    %c0_5 = arith.constant 0 : index
    %5 = vector.load %arg5[%c0_4, %c0_5] : memref<8x8xf32, #tpu.memory_space<vmem>>, vector<8x8xf32>
    %cst = arith.constant dense<0.000000e+00> : vector<8x8xf32>
    %6 = tpu.matmul %3, %3, %cst {dimension_numbers = #tpu.dot_dimension_numbers<[1], [1], [0], [0], [0, 0, 1, 0], [], []>} : vector<8x256xf32>, vector<8x256xf32>, vector<8x8xf32> -> vector<8x8xf32>
    %7 = arith.addf %5, %6 : vector<8x8xf32>
    %c0_6 = arith.constant 0 : index
    %c0_7 = arith.constant 0 : index
    %8 = vector.load %arg5[%c0_6, %c0_7] : memref<8x8xf32, #tpu.memory_space<vmem>>, vector<8x8xf32>
    tpu.vector_store %arg5[%c0_6, %c0_7], %7 {strides = array<i32>} : memref<8x8xf32, #tpu.memory_space<vmem>>, vector<8x8xf32>,
    %c0_8 = arith.constant 0 : index
    %c0_9 = arith.constant 0 : index
    %9 = vector.load %arg6[%c0_8, %c0_9] : memref<8x8xf32, #tpu.memory_space<vmem>>, vector<8x8xf32>
    %cst_10 = arith.constant dense<0.000000e+00> : vector<8x8xf32>
    %10 = tpu.matmul %4, %4, %cst_10 {dimension_numbers = #tpu.dot_dimension_numbers<[1], [1], [0], [0], [0, 0, 1, 0], [], []>} : vector<8x256xf32>, vector<8x256xf32>, vector<8x8xf32> -> vector<8x8xf32>
    %11 = arith.addf %9, %10 : vector<8x8xf32>
    %c0_11 = arith.constant 0 : index
    %c0_12 = arith.constant 0 : index
    %12 = vector.load %arg6[%c0_11, %c0_12] : memref<8x8xf32, #tpu.memory_space<vmem>>, vector<8x8xf32>
    tpu.vector_store %arg6[%c0_11, %c0_12], %11 {strides = array<i32>} : memref<8x8xf32, #tpu.memory_space<vmem>>, vector<8x8xf32>,
    %cst_13 = arith.constant dense<0.000000e+00> : vector<8xf32>
    %13 = vector.multi_reduction <add>, %3, %cst_13 [1] : vector<8x256xf32> to vector<8xf32>
    %14 = vector.shape_cast %13 : vector<8xf32> to vector<8x1xf32>
    %cst_14 = arith.constant dense<0.000000e+00> : vector<8xf32>
    %15 = vector.multi_reduction <add>, %4, %cst_14 [1] : vector<8x256xf32> to vector<8xf32>
    %16 = vector.shape_cast %15 : vector<8xf32> to vector<8x1xf32>
    %c0_15 = arith.constant 0 : index
    %c0_16 = arith.constant 0 : index
    %17 = vector.load %arg7[%c0_15, %c0_16] : memref<8x1xf32, #tpu.memory_space<vmem>>, vector<8x1xf32>
    %18 = arith.subf %14, %16 : vector<8x1xf32>
    %19 = arith.addf %17, %18 : vector<8x1xf32>
    %c0_17 = arith.constant 0 : index
    %c0_18 = arith.constant 0 : index
    %20 = vector.load %arg7[%c0_17, %c0_18] : memref<8x1xf32, #tpu.memory_space<vmem>>, vector<8x1xf32>
    tpu.vector_store %arg7[%c0_17, %c0_18], %19 {strides = array<i32>} : memref<8x1xf32, #tpu.memory_space<vmem>>, vector<8x1xf32>,
    %c0_i32_19 = arith.constant 0 : i32
    %21 = arith.cmpi eq, %arg1, %c0_i32_19 : i32
    %22 = arith.extui %21 : i1 to i32
    %c0_i32_20 = arith.constant 0 : i32
    %23 = arith.cmpi ne, %22, %c0_i32_20 : i32
    scf.if %23 {
      %c0_21 = arith.constant 0 : index
      %c0_22 = arith.constant 0 : index
      %24 = vector.load %arg5[%c0_21, %c0_22] : memref<8x8xf32, #tpu.memory_space<vmem>>, vector<8x8xf32>
      %c0_23 = arith.constant 0 : index
      %c0_24 = arith.constant 0 : index
      %25 = vector.load %arg6[%c0_23, %c0_24] : memref<8x8xf32, #tpu.memory_space<vmem>>, vector<8x8xf32>
      %26 = arith.subf %24, %25 : vector<8x8xf32>
      %c0_25 = arith.constant 0 : index
      %c0_26 = arith.constant 0 : index
      %27 = vector.load %arg7[%c0_25, %c0_26] : memref<8x1xf32, #tpu.memory_space<vmem>>, vector<8x1xf32>
      %cst_27 = arith.constant 5.000000e-01 : f32
      %28 = vector.broadcast %cst_27 : f32 to vector<8x1xf32>
      %29 = arith.mulf %28, %27 : vector<8x1xf32>
      %30 = vector.broadcast %29 : vector<8x1xf32> to vector<8x8xf32>
      %31 = arith.addf %26, %30 : vector<8x8xf32>
      %32 = arith.mulf %31, %31 : vector<8x8xf32>
      %33 = vector.shape_cast %32 : vector<8x8xf32> to vector<1x8x8xf32>
      %cst_28 = arith.constant dense<0.000000e+00> : vector<1xf32>
      %34 = vector.multi_reduction <add>, %33, %cst_28 [1, 2] : vector<1x8x8xf32> to vector<1xf32>
      %35 = vector.shape_cast %34 : vector<1xf32> to vector<1x1x1xf32>
      %36 = vector.extract %35[0, 0, 0] : f32 from vector<1x1x1xf32>
      %c0_29 = arith.constant 0 : index
      %c0_30 = arith.constant 0 : index
      %37 = vector.load %arg7[%c0_29, %c0_30] : memref<8x1xf32, #tpu.memory_space<vmem>>, vector<8x1xf32>
      %cst_31 = arith.constant dense<0.000000e+00> : vector<8x1xf32>
      %38 = tpu.matmul %31, %37, %cst_31 {dimension_numbers = #tpu.dot_dimension_numbers<[1], [0], [0], [1], [0, 0, 1, 1], [], []>, precision = #tpu.contract_precision<fp32>} : vector<8x8xf32>, vector<8x1xf32>, vector<8x1xf32> -> vector<8x1xf32>
      %cst_32 = arith.constant 2.000000e+00 : f32
      %cst_33 = arith.constant 5.000000e-01 : f32
      %39 = arith.mulf %cst_32, %cst_33 : f32
      %40 = vector.shape_cast %38 : vector<8x1xf32> to vector<1x8x1xf32>
      %cst_34 = arith.constant dense<0.000000e+00> : vector<1xf32>
      %41 = vector.multi_reduction <add>, %40, %cst_34 [1, 2] : vector<1x8x1xf32> to vector<1xf32>
      %42 = vector.shape_cast %41 : vector<1xf32> to vector<1x1x1xf32>
      %43 = vector.extract %42[0, 0, 0] : f32 from vector<1x1x1xf32>
      %44 = arith.mulf %39, %43 : f32
      %45 = arith.addf %36, %44 : f32
      %cst_35 = arith.constant 5.000000e-01 : f32
      %cst_36 = arith.constant 5.000000e-01 : f32
      %46 = arith.mulf %cst_35, %cst_36 : f32
      %cst_37 = arith.constant 8.000000e+00 : f32
      %47 = arith.mulf %cst_37, %46 : f32
      %48 = arith.mulf %37, %37 : vector<8x1xf32>
      %49 = vector.shape_cast %48 : vector<8x1xf32> to vector<1x8x1xf32>
      %cst_38 = arith.constant dense<0.000000e+00> : vector<1xf32>
      %50 = vector.multi_reduction <add>, %49, %cst_38 [1, 2] : vector<1x8x1xf32> to vector<1xf32>
      %51 = vector.shape_cast %50 : vector<1xf32> to vector<1x1x1xf32>
      %52 = vector.extract %51[0, 0, 0] : f32 from vector<1x1x1xf32>
      %53 = arith.mulf %47, %52 : f32
      %54 = arith.addf %45, %53 : f32
      %cst_39 = arith.constant 3.7252903E-6 : f32
      %55 = arith.mulf %cst_39, %54 : f32
      %c0_40 = arith.constant 0 : index
      %c0_41 = arith.constant 0 : index
      %56 = memref.load %arg4[%c0_40, %c0_41] : memref<1x1xf32, #tpu.memory_space<smem>>
      memref.store %55, %arg4[%c0_40, %c0_41] : memref<1x1xf32, #tpu.memory_space<smem>>
    } else {
    }
    return
  }
  func.func @transform_0(%arg0: i32, %arg1: i32) -> (i32, i32) {
    %c0_i32 = arith.constant 0 : i32
    %c0_i32_0 = arith.constant 0 : i32
    return %c0_i32, %arg1 : i32, i32
  }
  func.func @transform_1(%arg0: i32, %arg1: i32) -> (i32, i32) {
    %c0_i32 = arith.constant 0 : i32
    %c0_i32_0 = arith.constant 0 : i32
    return %c0_i32, %arg1 : i32, i32
  }
  func.func @transform_2(%arg0: i32, %arg1: i32) -> (i32, i32) {
    %c0_i32 = arith.constant 0 : i32
    %c0_i32_0 = arith.constant 0 : i32
    return %arg0, %c0_i32 : i32, i32
  }
}

</mosaic_0001>

<bundles_post_ra>
// kernel: tpu_custom_call.1
= control target key start
LH: loop header
LB: loop body
LE: loop exit
PB: predicated region body
PF: predicated region fallthrough
CT: control target
= control target key end

     0   :  { %7 = vsyncpa [#allocation6], 0  ;;  %s901_s0 = inlined_call_operand.hbm [shape: f32[8,256], index: 0, kind: input, shape index: {}]   ;;  %s902_s1 = inlined_call_operand.hbm [shape: f32[8,256], index: 1, kind: input, shape index: {}]   ;;  %s903_s2 = inlined_call_operand.hbm [shape: f32[1,1], index: 2, kind: output, shape index: {}]  }
   0x1   :  { %8 = vsyncpa [#allocation9], 0 }
   0x2   :  { %9 = vsyncpa [#allocation7], 0  ;;  %s833_s9 = smov [#allocation5]   ;;  %s834_s11 = smov [#allocation8]  }
   0x3   :  { %s16_s10 = sshll.u32 %s833_s9, 4  ;;  %s26_s12 = sshll.u32 %s834_s11, 4  ;;  %s17_s10 = int_to_ptr.vmem [resolvable:$true] %s16_s10  ;;  %s27_s12 = int_to_ptr.vmem [resolvable:$true] %s26_s12 }
   0x4   :  { %s787_s13 = scalar_lea.vmem %s17_s10, 256  ;;  %p792_p1 = scmp.lt.s32.totalorder %s17_s10, %s17_s10 }
   0x5   :  { %p788_p0 = scmp.ne.s32.totalorder %s17_s10, %s787_s13  ;;  %p793_p2 = scmp.lt.s32.totalorder %s787_s13, %s787_s13 }
   0x7   :  { %p794_p3 = por %p793_p2, %p792_p1 }
   0x9   :  { %p795_p4 = pnand %p794_p3, %p788_p0 }
   0xb   :  { %798 = shalt.err (!%p795_p4)
}
   0xc   :  { %19 = dma.hbm_to_vmem [thread:$0]  %s901_s0, 256, %s17_s10, [#allocation6]  }
   0xd   :  { %s807_s16 = scalar_lea.vmem %s27_s12, 256  ;;  %p812_p6 = scmp.lt.s32.totalorder %s27_s12, %s27_s12 }
   0xe   :  { %p808_p5 = scmp.ne.s32.totalorder %s27_s12, %s807_s16  ;;  %p813_p7 = scmp.lt.s32.totalorder %s807_s16, %s807_s16 }
  0x10   :  { %p814_p8 = por %p813_p7, %p812_p6 }
  0x12   :  { %p815_p9 = pnand %p814_p8, %p808_p5 }
  0x14   :  { %818 = shalt.err (!%p815_p9)
}
  0x15   :  { %29 = dma.hbm_to_vmem [thread:$0]  %s902_s1, 256, %s27_s12, [#allocation9]  }
  0x16   :  { %827 = dma.done.wait [#allocation6], 256  }
  0x17   :  { %828 = vsyncadd [#allocation6], 4294967040 }
  0x18   :  { %829 = dma.done.wait [#allocation9], 256  }
  0x19   :  { %830 = vsyncadd [#allocation9], 4294967040  ;;  %v45_v0 = vld [vmem:[#allocation5] sm:$0xff]  ;;  %v46_v1 = vld [vmem:[#allocation5 + $0x8] sm:$0xff]  ;;  %vm43_vm0 = vcmask 7168   ;;  %v835_v6 = vmov 0.0  }
  0x1a   :  { %v47_v2 = vld [vmem:[#allocation8] sm:$0xff]  ;;  %v196_v3 = vadd.f32 %v46_v1, %v45_v0  ;;  %v48_v4 = vld [vmem:[#allocation8 + $0x8] sm:$0xff]  ;;  %80 = vmatprep.subr.mxu0 %v46_v1  ;;  %114 = vmatprep.mubr.f32.mxu0 %v46_v1  ;;  %44 = vst.msk [vmem:[#allocation4] sm:$0xff] %vm43_vm0, %v835_v6  ;;  %v836_v7 = vmov 0   ;;  %vm40_vm1 = vcmask 64512   ;;  %vm837_vm2 = vmmov 0  }
  0x1b   :  { %154 = vmatprep.subr.mxu1 %v48_v4  ;;  %81 = vmatpush1.xpose.msra.mxu0 %v45_v0  ;;  %v199_v5 = vadd.f32 %v48_v4, %v47_v2  ;;  %41 = vst.msk [vmem:[#allocation2] sm:$0xff] %vm40_vm1, %v835_v6  ;;  %42 = vst.msk [vmem:[#allocation3] sm:$0xff] %vm40_vm1, %v835_v6  ;;  %s838_s24 = smov [#allocation10]  }
  0x1c   :  { %197 = vadd.xlane.f32.xlu0 %v196_v3  ;;  %155 = vmatpush1.xpose.msra.mxu1 %v47_v2 }
  0x1d   :  { %188 = vmatprep.mubr.f32.mxu1 %v48_v4  ;;  %735 = vmatprep.subr.mxu0 %v835_v6 }
  0x1e   :  { %115 = vmatmul.mubr.f32.vlgmr.msra.gmra.mxu0 %v45_v0  ;;  %740 = vmatprep.subr.mxu1 %v835_v6 }
  0x1f   :  { %189 = vmatmul.mubr.f32.vlgmr.msra.gmra.mxu1 %v47_v2  ;;  %777 = vset.pattern.permute.xlu1 %v836_v7 }
  0x20   :  { %200 = vadd.xlane.f32.xlu0 %v199_v5  ;;  %742 = vmatprep.mubr.msk.f32.mxu1 %vm837_vm2, %v835_v6 }
  0x21   :  { %778 = vset.pattern.permute.xlu0 %v836_v7  ;;  %v202_v10 = vld [vmem:[#allocation4] sm:$0xff]  ;;  %737 = vmatprep.mubr.msk.f32.mxu0 %vm837_vm2, %v835_v6 }
  0x22   :  { %v49_v20 = vld [vmem:[#allocation2] sm:$0xff]  ;;  %v123_v21 = vld [vmem:[#allocation3] sm:$0xff] }
  0xa5   :  { %v198_v8 = vpop.xlane.xlu0 %197 }
  0xa9   :  { %v201_v9 = vpop.xlane.xlu0 %200 }
  0xaa   :  { %v203_v11 = vsub.f32 %v198_v8, %v201_v9 }
  0xac   :  { %v204_v12 = vadd.f32 %v203_v11, %v202_v10 }
  0xae   :  { %206 = vst.msk [vmem:[#allocation4] sm:$0xff] %vm43_vm0, %v204_v12 }
  0xb5   :  { %v869_v13 = vld [vmem:[#allocation4] sm:$0xff] }
  0xb6   :  { %v266_v14 = vand.u32 4294901760, %v869_v13  ;;  %v214_v15 = vmul.f32 0.5, %v869_v13  ;;  %v692_v2 = vmul.f32 %v869_v13, %v869_v13 }
  0xb8   :  { %736 = vmatpush3.msra.mxu0 %v266_v14  ;;  %217 = vperm.xlu1 %777, %v214_v15   ;;  %v343_v16 = vsub.f32 %v869_v13, %v266_v14  ;;  %v693_v3 = vsel %vm43_vm0, %v692_v2, 0.0 }
  0xb9   :  { %745 = vmatprep.subr.mxu0 %v835_v6 }
  0xba   :  { %v344_v17 = vand.u32 4294901760, %v343_v16 }
  0xbc   :  { %v345_v18 = vsub.f32 %v343_v16, %v344_v17 }
  0xbe   :  { %v346_v19 = vand.u32 4294901760, %v345_v18 }
  0xc0   :  { %741 = vmatpush3.msra.mxu1 %v346_v19 }
  0xc1   :  { %750 = vmatprep.subr.mxu1 %v835_v6 }
  0xde   :  { %v116_v22 = vpop.f32.mrf.mxu0 }
  0xdf   :  { %v120_v23 = vadd.f32 %v116_v22, %v49_v20  ;;  %v190_v24 = vpop.f32.mrf.mxu1 }
  0xe0   :  { %v194_v25 = vadd.f32 %v190_v24, %v123_v21  ;;  %v118_v26 = vpop.f32.mrf.mxu0 }
  0xe1   :  { %122 = vst.msk [vmem:[#allocation2] sm:$0xff] %vm40_vm1, %v120_v23  ;;  %v192_v27 = vpop.f32.mrf.mxu1 }
  0xe2   :  { %195 = vst.msk [vmem:[#allocation3] sm:$0xff] %vm40_vm1, %v194_v25 }
  0xe8   :  { %v210_v28 = vld [vmem:[#allocation2] sm:$0xff] }
  0xe9   :  { %v211_v29 = vld [vmem:[#allocation3] sm:$0xff] }
  0xea   :  { %v212_v30 = vsub.f32 %v210_v28, %v211_v29 }
 0x133   :  { %v218_v31 = vpop.permute.xlu1 %217 }
 0x134   :  { %v220_v32 = vadd.f32 %v218_v31, %v212_v30 }
 0x136   :  { %v233_v33 = vsel %vm40_vm1, %v220_v32, 0  ;;  %v221_v34 = vmul.f32 %v220_v32, %v220_v32 }
 0x137   :  { %v301_v35 = vand.u32 4294901760, %v233_v33 }
 0x138   :  { %v222_v36 = vsel %vm40_vm1, %v221_v34, 0.0 }
 0x139   :  { %v302_v37 = vsub.f32 %v233_v33, %v301_v35  ;;  %743 = vmatmul.mubr.f32.vlgmr.msra.gmra.mxu1 %v301_v35  ;;  %223 = vadd.xlane.f32.xlu1 %v222_v36 }
 0x13a   :  { %751 = vmatpush3.msra.mxu1 %v266_v14  ;;  %752 = vmatprep.mubr.msk.f32.mxu1 %vm837_vm2, %v835_v6 }
 0x13b   :  { %760 = vmatprep.subr.mxu1 %v835_v6  ;;  %v303_v38 = vand.u32 4294901760, %v302_v37 }
 0x13d   :  { %753 = vmatmul.mubr.f32.vlgmr.msra.gmra.mxu1 %v303_v38  ;;  %v304_v39 = vsub.f32 %v302_v37, %v303_v38 }
 0x13e   :  { %761 = vmatpush3.msra.mxu1 %v266_v14  ;;  %762 = vmatprep.mubr.msk.f32.mxu1 %vm837_vm2, %v835_v6 }
 0x13f   :  { %v305_v40 = vand.u32 4294901760, %v304_v39 }
 0x141   :  { %738 = vmatmul.mubr.f32.vlgmr.msra.gmra.mxu0 %v305_v40  ;;  %763 = vmatmul.mubr.f32.vlgmr.msra.gmra.mxu1 %v301_v35 }
 0x142   :  { %746 = vmatpush3.msra.mxu0 %v343_v16  ;;  %747 = vmatprep.mubr.msk.f32.mxu0 %vm837_vm2, %v835_v6 }
 0x143   :  { %755 = vmatprep.subr.mxu0 %v835_v6 }
 0x145   :  { %748 = vmatmul.mubr.f32.vlgmr.msra.gmra.mxu0 %v302_v37 }
 0x146   :  { %756 = vmatpush3.msra.mxu0 %v344_v17  ;;  %757 = vmatprep.mubr.msk.f32.mxu0 %vm837_vm2, %v835_v6 }
 0x149   :  { %758 = vmatmul.mubr.f32.vlgmr.msra.gmra.mxu0 %v301_v35 }
 0x1c2   :  { %v224_v41 = vpop.xlane.xlu1 %223 }
 0x1c3   :  { %v225_v42 = vrot.slane %v224_v41, 4 }
 0x1c5   :  { %v226_v43 = vadd.f32 %v225_v42, %v224_v41 }
 0x1c7   :  { %v227_v44 = vrot.slane %v226_v43, 2 }
 0x1c9   :  { %v228_v45 = vadd.f32 %v227_v44, %v226_v43 }
 0x1cb   :  { %v229_v46 = vrot.slane %v228_v45, 1 }
 0x1cd   :  { %v230_v47 = vadd.f32 %v229_v46, %v228_v45 }
 0x1cf   :  { %765 = vpush %v230_v47 }
 0x1f9   :  { %v383_v48 = vpop.f32.mrf.mxu1 }
 0x1fb   :  { %v744_v49 = vpop.f32.mrf.mxu1 }
 0x1fd   :  { %v531_v50 = vpop.f32.mrf.mxu1 }
 0x1ff   :  { %v754_v51 = vpop.f32.mrf.mxu1 }
 0x200   :  { %s766_s0 = spop %765 }
 0x201   :  { %v307_v52 = vpop.f32.mrf.mxu0  ;;  %v677_v53 = vpop.f32.mrf.mxu1 }
 0x202   :  { %v384_v56 = vadd.f32 %v383_v48, %v307_v52 }
 0x203   :  { %v739_v54 = vpop.f32.mrf.mxu0  ;;  %v764_v55 = vpop.f32.mrf.mxu1 }
 0x205   :  { %v457_v57 = vpop.f32.mrf.mxu0 }
 0x206   :  { %v458_v58 = vadd.f32 %v457_v57, %v384_v56 }
 0x207   :  { %v749_v59 = vpop.f32.mrf.mxu0 }
 0x208   :  { %v532_v60 = vadd.f32 %v531_v50, %v458_v58 }
 0x209   :  { %v605_v61 = vpop.f32.mrf.mxu0 }
 0x20a   :  { %v606_v62 = vadd.f32 %v605_v61, %v532_v60 }
 0x20b   :  { %v759_v63 = vpop.f32.mrf.mxu0 }
 0x20c   :  { %v678_v0 = vadd.f32 %v677_v53, %v606_v62 }
 0x20e   :  { %v681_v1 = vsel %vm43_vm0, %v678_v0, 0.0 }
 0x20f   :  { %682 = vadd.xlane.f32.xlu0 %v681_v1 }
 0x213   :  { %694 = vadd.xlane.f32.xlu0 %v693_v3 }
 0x298   :  { %v683_v4 = vpop.xlane.xlu0 %682 }
 0x299   :  { %v684_v5 = vrot.slane %v683_v4, 4 }
 0x29b   :  { %v685_v6 = vadd.f32 %v684_v5, %v683_v4 }
 0x29c   :  { %v695_v7 = vpop.xlane.xlu0 %694 }
 0x29d   :  { %v686_v8 = vrot.slane %v685_v6, 2  ;;  %v696_v9 = vrot.slane %v695_v7, 4 }
 0x29f   :  { %v697_v10 = vadd.f32 %v696_v9, %v695_v7  ;;  %v687_v11 = vadd.f32 %v686_v8, %v685_v6 }
 0x2a1   :  { %v698_v12 = vrot.slane %v697_v10, 2  ;;  %v688_v14 = vrot.slane %v687_v11, 1 }
 0x2a3   :  { %v699_v15 = vadd.f32 %v698_v12, %v697_v10  ;;  %v689_v16 = vadd.f32 %v688_v14, %v687_v11 }
 0x2a5   :  { %767 = vpush %v689_v16  ;;  %v700_v17 = vrot.slane %v699_v15, 1 }
 0x2a7   :  { %v701_v18 = vadd.f32 %v700_v17, %v699_v15 }
 0x2a9   :  { %769 = vpush %v701_v18 }
 0x2d6   :  { %s768_s1 = spop %767 }
 0x2d7   :  { %s691_s20 = sadd.f32 %s768_s1, %s766_s0 }
 0x2da   :  { %s770_s19 = spop %769 }
 0x2db   :  { %s703_s21 = smul.f32 2.0, %s770_s19 }
 0x2dd   :  { %s704_s22 = sadd.f32 %s703_s21, %s691_s20 }
 0x2df   :  { %s705_s23 = smul.f32 3.7252903e-06, %s704_s22 }
 0x2e1   :  { %707 = sst [smem:[#allocation10]] %s705_s23 }
 0x2e2   :  { %715 = dma.smem_to_hbm %s838_s24, 16, %s903_s2, [#allocation7]  }
 0x2e3   :  { %831 = dma.done.wait [#allocation7], 16  }
 0x2e4   :  { %832 = vsyncadd [#allocation7], 4294967280 }
 0x2e5   :  { %719 = sfence }
 0x2e6   :  { %720 = vsyncpa [#allocation6], 1 }
 0x2e7   :  { %721 = vsyncpa [#allocation9], 1 }
 0x2e8   :  { %722 = vsyncpa [#allocation7], 1 }

</bundles_post_ra>
